<compile_context>
chip_gen: v7x
topology: tpu7x:2x2x1
jax: 0.10.0
libtpu: 0.0.40
codegen_flags: <defaults>
</compile_context>

<pallas_src>
import jax
import jax.numpy as jnp
from jax import lax
from jax.experimental import pallas as pl
from jax.experimental.pallas import tpu as pltpu

_MASK_ROWS = 8  # replicate mask rows so the MXU LHS is a native (8, ts) tile


def _pooled_logit_kernel(nb_ref, h_ref, m_ref, w_ref, b_ref, o_ref,
                         acc_ref, den_ref):
    """One grid step over a (tb, ts, D) hidden tile.

    nb_ref : [B//tb] int32 (SMEM, scalar-prefetched)  #seq blocks with real tokens
    h_ref  : [tb, ts, D]   hidden tile (bf16 or f32)
    m_ref  : [tb, 8, ts]   attention-mask tile (replicated rows, hidden dtype)
    w_ref  : [1, 1, D]     logit-head weight, lane-dense (f32)
    b_ref  : [1]           logit-head bias (SMEM scalar, f32)
    o_ref  : [tb, 1, 1]    logits output tile (f32)
    acc_ref: [tb, 8, D] f32 scratch  (masked-sum accumulator)
    den_ref: [tb, 8, 1] f32 scratch  (mask-count accumulator)
    """
    bi = pl.program_id(0)
    si = pl.program_id(1)

    @pl.when(si == 0)
    def _init():
        acc_ref[...] = jnp.zeros_like(acc_ref)
        den_ref[...] = jnp.zeros_like(den_ref)

    # Skip fully-padded sequence tiles (the index_map clamps the block index,
    # so no DMA was issued for them either).
    @pl.when(si < nb_ref[bi])
    def _accumulate():
        h = h_ref[...]                                   # (tb, ts, D)
        m = m_ref[...]                                   # (tb, 8, ts)
        # Masked sum over the sequence tile as a batched MXU matmul: bf16
        # operands, f32 accumulation. Keeps the VPU free on v7x.
        acc_ref[...] += lax.dot_general(
            m, h,
            dimension_numbers=(((2,), (1,)), ((0,), (0,))),
            preferred_element_type=jnp.float32)          # (tb, 8, D)
        den_ref[...] += jnp.sum(m.astype(jnp.float32), axis=-1, keepdims=True)

    @pl.when(si == pl.num_programs(1) - 1)
    def _finalize():
        pooled = acc_ref[...] / den_ref[...]             # exact divide, (tb,8,D)
        # N=1 logit head stays off the MXU: VPU multiply + lane reduce.
        logits = jnp.sum(pooled * w_ref[...], axis=-1, keepdims=True)  # (tb,8,1)
        logits = logits + b_ref[0]
        o_ref[...] = logits[:, 0:1, :].astype(o_ref.dtype)


def _vmem_capacity_bytes(default=64 << 20):
    try:
        cap = getattr(pltpu.get_tpu_info(), "vmem_capacity_bytes", None)
        if cap:
            return int(cap)
    except Exception:
        pass
    return default


def _pick_tb(B):
    divs = [d for d in range(min(8, B), 0, -1) if B % d == 0]
    multi = [d for d in divs if B // d >= 2]     # keep both v7x TCs busy
    return multi[0] if multi else divs[0]


def _tile_bytes(tb, ts, D, h_item):
    hid = 2 * tb * ts * D * h_item               # double-buffered hidden tiles
    msk = 2 * tb * 16 * ts * h_item              # double-buffered, sublane-padded mask
    acc = 2 * tb * _MASK_ROWS * D * 4            # f32 accumulator + matmul result temp
    wgt = 8 * D * 4
    return hid + msk + acc + wgt + (2 << 20)


def _pick_ts(S, D, tb, h_item, cap):
    budget = int(0.75 * cap)
    cands = sorted({c for c in range(128, min(S, 1024) + 1, 128) if S % c == 0},
                   reverse=True)
    for c in cands:
        if _tile_bytes(tb, c, D, h_item) <= budget:
            return c
    if cands:
        return cands[-1]
    return S                                     # short/unaligned sequence: one block


def encoder_with_logit_head(hidden, mask, w, b, *, tb=None, ts=None,
                            vmem_limit_bytes=None):
    """Fused masked-mean pooling + linear logit head.

    hidden: [B, S, D] (bf16 or f32) last encoder hidden state
    mask:   [B, S]    attention mask (0/1)
    w:      [D, 1]    logit-head weight (nn.Linear(D, 1))
    b:      scalar / [1] / [1,1] logit-head bias
    returns [B, 1] f32 logits
    """
    B, S, D = hidden.shape
    h_item = hidden.dtype.itemsize
    cap = _vmem_capacity_bytes()

    if tb is None:
        tb = _pick_tb(B)
    tb = min(tb, B)
    assert B % tb == 0, (B, tb)

    if ts is None:
        ts = _pick_ts(S, D, tb, h_item, cap)
    ts = min(ts, S)
    assert S % ts == 0, (S, ts)
    assert ts == S or ts % 128 == 0, "sequence tile must be lane-aligned or full"
    n_sblk = S // ts

    # Lane-dense mask in the hidden dtype: [B, 8, S]; replicated rows give the
    # MXU a native (8, ts) LHS tile at <1% of the hidden tensor's HBM traffic.
    mask_f = jnp.asarray(mask, jnp.float32)
    mask8 = jnp.broadcast_to(mask_f[:, None, :], (B, _MASK_ROWS, S)).astype(hidden.dtype)

    # Scalar-prefetched per-batch-tile count of sequence blocks containing any
    # real token (robust to non-contiguous masks via the last kept position).
    last_pos = jnp.max(mask_f * jnp.arange(1, S + 1, dtype=jnp.float32), axis=1)
    tile_last = jnp.max(last_pos.reshape(B // tb, tb), axis=1)
    nb = jnp.clip(jnp.ceil(tile_last / ts), 1, n_sblk).astype(jnp.int32)

    w_row = jnp.asarray(w, jnp.float32).reshape(1, 1, D)
    b_smem = jnp.asarray(b, jnp.float32).reshape(1)

    need = _tile_bytes(tb, ts, D, h_item)
    if vmem_limit_bytes is None:
        vmem_limit_bytes = min(cap, 2 * need + (4 << 20))

    grid = (B // tb, n_sblk)
    out = pl.pallas_call(
        _pooled_logit_kernel,
        out_shape=jax.ShapeDtypeStruct((B, 1, 1), jnp.float32),
        grid_spec=pltpu.PrefetchScalarGridSpec(
            num_scalar_prefetch=1,
            grid=grid,
            in_specs=[
                pl.BlockSpec(
                    (tb, ts, D),
                    lambda bi, si, nb_r: (bi, jnp.minimum(si, nb_r[bi] - 1), 0)),
                pl.BlockSpec(
                    (tb, _MASK_ROWS, ts),
                    lambda bi, si, nb_r: (bi, 0, jnp.minimum(si, nb_r[bi] - 1))),
                pl.BlockSpec((1, 1, D), lambda bi, si, nb_r: (0, 0, 0)),
                pl.BlockSpec(memory_space=pltpu.MemorySpace.SMEM),
            ],
            out_specs=pl.BlockSpec((tb, 1, 1), lambda bi, si, nb_r: (bi, 0, 0)),
            scratch_shapes=[
                pltpu.VMEM((tb, _MASK_ROWS, D), jnp.float32),   # masked-sum acc
                pltpu.VMEM((tb, _MASK_ROWS, 1), jnp.float32),   # mask-count acc
            ],
        ),
        compiler_params=pltpu.CompilerParams(
            dimension_semantics=("parallel", "arbitrary"),
            vmem_limit_bytes=int(vmem_limit_bytes),
        ),
    )(nb, hidden, mask8, w_row, b_smem)
    return out.reshape(B, 1)


def reference(hidden, mask, w, b):
    pooled = (hidden * mask[:, :, None]).sum(axis=1) / mask.sum(axis=1, keepdims=True)
    return pooled @ jnp.asarray(w).reshape(-1, 1) + jnp.asarray(b).reshape(1, 1)


if __name__ == "__main__":
    # Small deterministic shapes: grid = (2, 2) so both the accumulation loop,
    # the padded-tile skip (batch tile 0 has max length 128 -> nb=1) and the
    # 2-block "parallel" batch axis are exercised.
    B, S, D, VOCAB = 16, 256, 128, 512

    key = jax.random.PRNGKey(0)
    k_ids, k_emb, k_w, k_b = jax.random.split(key, 4)

    input_ids = jax.random.randint(k_ids, (B, S), 0, VOCAB)
    lengths = jnp.array([17, 32, 45, 64, 80, 96, 100, 128,
                         256, 200, 150, 129, 256, 240, 256, 192], dtype=jnp.int32)
    attention_mask = (jnp.arange(S)[None, :] < lengths[:, None]).astype(jnp.float32)

    # Stand-in "encoder": deterministic embedding lookup (plain-JAX glue).
    # TODO(synk): real flan-T5 encoder forward (pretrained weights) is external.
    emb_table = jax.random.normal(k_emb, (VOCAB, D), dtype=jnp.float32) * 0.1
    last_hidden_state = jnp.take(emb_table, input_ids, axis=0).astype(jnp.bfloat16)

    # Logit head parameters: nn.Linear(model_dim, 1)
    w = jax.random.normal(k_w, (D, 1), dtype=jnp.float32) * 0.05
    b = jax.random.normal(k_b, (1, 1), dtype=jnp.float32) * 0.05

    logits = encoder_with_logit_head(last_hidden_state, attention_mask, w, b,
                                     tb=8, ts=128)
    logits = jax.block_until_ready(logits)

    ref = reference(last_hidden_state.astype(jnp.float32), attention_mask, w, b)
    assert logits.shape == (B, 1), logits.shape
    assert jnp.allclose(logits, ref, atol=1e-3, rtol=1e-3), (logits, ref)

    print("KERNEL_OK")
</pallas_src>

<mosaic_0001>
module attributes {stable_mosaic.version = 11 : i64} {
  func.func @_pooled_logit_kernel(%arg0: i32, %arg1: i32, %arg2: memref<2xi32, #tpu.memory_space<smem>>, %arg3: memref<8x128x128xbf16, #tpu.memory_space<vmem>>, %arg4: memref<8x8x128xbf16, #tpu.memory_space<vmem>>, %arg5: memref<1x1x128xf32, #tpu.memory_space<vmem>>, %arg6: memref<1xf32, #tpu.memory_space<smem>>, %arg7: memref<8x1x1xf32, #tpu.memory_space<vmem>>, %arg8: memref<8x8x128xf32, #tpu.memory_space<vmem>>, %arg9: memref<8x8x1xf32, #tpu.memory_space<vmem>>) attributes {dimension_semantics = [#tpu.dimension_semantics<parallel>, #tpu.dimension_semantics<arbitrary>], iteration_bounds = array<i64: 2, 2>, scalar_prefetch = 1 : i64, scratch_operands = 2 : i64, tpu.core_type = #tpu.core_type<tc>, window_params = [{transform_indices = @transform_0, window_bounds = array<i64: 8, 128, 128>}, {transform_indices = @transform_1, window_bounds = array<i64: 8, 8, 128>}, {pipeline_mode = #tpu.pipeline_mode<synchronous>, transform_indices = @transform_2, window_bounds = array<i64: 1, 1, 128>}, {transform_indices = @transform_3, window_bounds = array<i64: 1>}, {transform_indices = @transform_4, window_bounds = array<i64: 8, 1, 1>}]} {
    %c0_i32 = arith.constant 0 : i32
    %0 = arith.cmpi eq, %arg1, %c0_i32 : i32
    %1 = arith.extui %0 : i1 to i32
    %c0_i32_0 = arith.constant 0 : i32
    %2 = arith.cmpi ne, %1, %c0_i32_0 : i32
    scf.if %2 {
      %cst = arith.constant 0.000000e+00 : f32
      %11 = vector.broadcast %cst : f32 to vector<8x8x128xf32>
      %c0 = arith.constant 0 : index
      %c0_3 = arith.constant 0 : index
      %c0_4 = arith.constant 0 : index
      %12 = vector.load %arg8[%c0, %c0_3, %c0_4] : memref<8x8x128xf32, #tpu.memory_space<vmem>>, vector<8x8x128xf32>
      tpu.vector_store %arg8[%c0, %c0_3, %c0_4], %11 {strides = array<i32>} : memref<8x8x128xf32, #tpu.memory_space<vmem>>, vector<8x8x128xf32>,
      %cst_5 = arith.constant 0.000000e+00 : f32
      %13 = vector.broadcast %cst_5 : f32 to vector<8x8x1xf32>
      %c0_6 = arith.constant 0 : index
      %c0_7 = arith.constant 0 : index
      %c0_8 = arith.constant 0 : index
      %14 = vector.load %arg9[%c0_6, %c0_7, %c0_8] : memref<8x8x1xf32, #tpu.memory_space<vmem>>, vector<8x8x1xf32>
      tpu.vector_store %arg9[%c0_6, %c0_7, %c0_8], %13 {strides = array<i32>} : memref<8x8x1xf32, #tpu.memory_space<vmem>>, vector<8x8x1xf32>,
    } else {
    }
    %3 = arith.index_cast %arg0 : i32 to index
    %4 = memref.load %arg2[%3] : memref<2xi32, #tpu.memory_space<smem>>
    %5 = arith.cmpi slt, %arg1, %4 : i32
    %6 = arith.extui %5 : i1 to i32
    %c0_i32_1 = arith.constant 0 : i32
    %7 = arith.cmpi ne, %6, %c0_i32_1 : i32
    scf.if %7 {
      %c0 = arith.constant 0 : index
      %c0_3 = arith.constant 0 : index
      %c0_4 = arith.constant 0 : index
      %11 = vector.load %arg3[%c0, %c0_3, %c0_4] : memref<8x128x128xbf16, #tpu.memory_space<vmem>>, vector<8x128x128xbf16>
      %c0_5 = arith.constant 0 : index
      %c0_6 = arith.constant 0 : index
      %c0_7 = arith.constant 0 : index
      %12 = vector.load %arg4[%c0_5, %c0_6, %c0_7] : memref<8x8x128xbf16, #tpu.memory_space<vmem>>, vector<8x8x128xbf16>
      %c0_8 = arith.constant 0 : index
      %c0_9 = arith.constant 0 : index
      %c0_10 = arith.constant 0 : index
      %13 = vector.load %arg8[%c0_8, %c0_9, %c0_10] : memref<8x8x128xf32, #tpu.memory_space<vmem>>, vector<8x8x128xf32>
      %cst = arith.constant dense<0.000000e+00> : vector<8x8x128xf32>
      %14 = tpu.matmul %12, %11, %cst {dimension_numbers = #tpu.dot_dimension_numbers<[2], [1], [1], [2], [0, 0, 0, 1, 1, 2], [0], [0]>} : vector<8x8x128xbf16>, vector<8x128x128xbf16>, vector<8x8x128xf32> -> vector<8x8x128xf32>
      %15 = arith.addf %13, %14 : vector<8x8x128xf32>
      %c0_11 = arith.constant 0 : index
      %c0_12 = arith.constant 0 : index
      %c0_13 = arith.constant 0 : index
      %16 = vector.load %arg8[%c0_11, %c0_12, %c0_13] : memref<8x8x128xf32, #tpu.memory_space<vmem>>, vector<8x8x128xf32>
      tpu.vector_store %arg8[%c0_11, %c0_12, %c0_13], %15 {strides = array<i32>} : memref<8x8x128xf32, #tpu.memory_space<vmem>>, vector<8x8x128xf32>,
      %c0_14 = arith.constant 0 : index
      %c0_15 = arith.constant 0 : index
      %c0_16 = arith.constant 0 : index
      %17 = vector.load %arg9[%c0_14, %c0_15, %c0_16] : memref<8x8x1xf32, #tpu.memory_space<vmem>>, vector<8x8x1xf32>
      %18 = arith.extf %12 : vector<8x8x128xbf16> to vector<8x8x128xf32>
      %cst_17 = arith.constant dense<0.000000e+00> : vector<8x8xf32>
      %19 = vector.multi_reduction <add>, %18, %cst_17 [2] : vector<8x8x128xf32> to vector<8x8xf32>
      %20 = vector.shape_cast %19 : vector<8x8xf32> to vector<8x8x1xf32>
      %21 = arith.addf %17, %20 : vector<8x8x1xf32>
      %c0_18 = arith.constant 0 : index
      %c0_19 = arith.constant 0 : index
      %c0_20 = arith.constant 0 : index
      %22 = vector.load %arg9[%c0_18, %c0_19, %c0_20] : memref<8x8x1xf32, #tpu.memory_space<vmem>>, vector<8x8x1xf32>
      tpu.vector_store %arg9[%c0_18, %c0_19, %c0_20], %21 {strides = array<i32>} : memref<8x8x1xf32, #tpu.memory_space<vmem>>, vector<8x8x1xf32>,
    } else {
    }
    %c1_i32 = arith.constant 1 : i32
    %8 = arith.cmpi eq, %arg1, %c1_i32 : i32
    %9 = arith.extui %8 : i1 to i32
    %c0_i32_2 = arith.constant 0 : i32
    %10 = arith.cmpi ne, %9, %c0_i32_2 : i32
    scf.if %10 {
      %c0 = arith.constant 0 : index
      %c0_3 = arith.constant 0 : index
      %c0_4 = arith.constant 0 : index
      %11 = vector.load %arg8[%c0, %c0_3, %c0_4] : memref<8x8x128xf32, #tpu.memory_space<vmem>>, vector<8x8x128xf32>
      %c0_5 = arith.constant 0 : index
      %c0_6 = arith.constant 0 : index
      %c0_7 = arith.constant 0 : index
      %12 = vector.load %arg9[%c0_5, %c0_6, %c0_7] : memref<8x8x1xf32, #tpu.memory_space<vmem>>, vector<8x8x1xf32>
      %13 = vector.broadcast %12 : vector<8x8x1xf32> to vector<8x8x128xf32>
      %14 = arith.divf %11, %13 : vector<8x8x128xf32>
      %c0_8 = arith.constant 0 : index
      %c0_9 = arith.constant 0 : index
      %c0_10 = arith.constant 0 : index
      %15 = vector.load %arg5[%c0_8, %c0_9, %c0_10] : memref<1x1x128xf32, #tpu.memory_space<vmem>>, vector<1x1x128xf32>
      %16 = vector.broadcast %15 : vector<1x1x128xf32> to vector<8x8x128xf32>
      %17 = arith.mulf %14, %16 : vector<8x8x128xf32>
      %cst = arith.constant dense<0.000000e+00> : vector<8x8xf32>
      %18 = vector.multi_reduction <add>, %17, %cst [2] : vector<8x8x128xf32> to vector<8x8xf32>
      %19 = vector.shape_cast %18 : vector<8x8xf32> to vector<8x8x1xf32>
      %c0_11 = arith.constant 0 : index
      %20 = memref.load %arg6[%c0_11] : memref<1xf32, #tpu.memory_space<smem>>
      %21 = vector.broadcast %20 : f32 to vector<8x8x1xf32>
      %22 = arith.addf %19, %21 : vector<8x8x1xf32>
      %23 = vector.extract_strided_slice %22 {offsets = [0, 0, 0], sizes = [8, 1, 1], strides = [1, 1, 1]} : vector<8x8x1xf32> to vector<8x1x1xf32>
      %c0_12 = arith.constant 0 : index
      %c0_13 = arith.constant 0 : index
      %c0_14 = arith.constant 0 : index
      %24 = vector.load %arg7[%c0_12, %c0_13, %c0_14] : memref<8x1x1xf32, #tpu.memory_space<vmem>>, vector<8x1x1xf32>
      tpu.vector_store %arg7[%c0_12, %c0_13, %c0_14], %23 {strides = array<i32>} : memref<8x1x1xf32, #tpu.memory_space<vmem>>, vector<8x1x1xf32>,
    } else {
    }
    return
  }
  func.func @transform_0(%arg0: i32, %arg1: i32, %arg2: memref<2xi32, #tpu.memory_space<smem>>) -> (i32, i32, i32) {
    %0 = arith.index_cast %arg0 : i32 to index
    %1 = memref.load %arg2[%0] : memref<2xi32, #tpu.memory_space<smem>>
    %c1_i32 = arith.constant 1 : i32
    %2 = arith.subi %1, %c1_i32 : i32
    %3 = arith.minsi %arg1, %2 : i32
    %c0_i32 = arith.constant 0 : i32
    %c0_i32_0 = arith.constant 0 : i32
    return %arg0, %3, %c0_i32 : i32, i32, i32
  }
  func.func @transform_1(%arg0: i32, %arg1: i32, %arg2: memref<2xi32, #tpu.memory_space<smem>>) -> (i32, i32, i32) {
    %0 = arith.index_cast %arg0 : i32 to index
    %1 = memref.load %arg2[%0] : memref<2xi32, #tpu.memory_space<smem>>
    %c1_i32 = arith.constant 1 : i32
    %2 = arith.subi %1, %c1_i32 : i32
    %3 = arith.minsi %arg1, %2 : i32
    %c0_i32 = arith.constant 0 : i32
    %c0_i32_0 = arith.constant 0 : i32
    return %arg0, %c0_i32, %3 : i32, i32, i32
  }
  func.func @transform_2(%arg0: i32, %arg1: i32, %arg2: memref<2xi32, #tpu.memory_space<smem>>) -> (i32, i32, i32) {
    %c0_i32 = arith.constant 0 : i32
    %c0_i32_0 = arith.constant 0 : i32
    %c0_i32_1 = arith.constant 0 : i32
    %c0_i32_2 = arith.constant 0 : i32
    return %c0_i32, %c0_i32_0, %c0_i32_1 : i32, i32, i32
  }
  func.func @transform_3(%arg0: i32, %arg1: i32, %arg2: memref<2xi32, #tpu.memory_space<smem>>) -> i32 {
    %c0_i32 = arith.constant 0 : i32
    %c0_i32_0 = arith.constant 0 : i32
    return %c0_i32 : i32
  }
  func.func @transform_4(%arg0: i32, %arg1: i32, %arg2: memref<2xi32, #tpu.memory_space<smem>>) -> (i32, i32, i32) {
    %c0_i32 = arith.constant 0 : i32
    %c0_i32_0 = arith.constant 0 : i32
    %c0_i32_1 = arith.constant 0 : i32
    return %arg0, %c0_i32, %c0_i32_0 : i32, i32, i32
  }
}

</mosaic_0001>

<bundles_post_ra>
// kernel: tpu_custom_call.1
= control target key start
LH: loop header
LB: loop body
LE: loop exit
PB: predicated region body
PF: predicated region fallthrough
CT: control target
= control target key end

     0   :  { %s2696_s0 = inlined_call_operand.vmem [shape: s32[2], index: 0, kind: input, shape index: {}]   ;;  %s2697_s1 = inlined_call_operand.hbm [shape: bf16[16,256,128], index: 1, kind: input, shape index: {}]   ;;  %s2698_s2 = inlined_call_operand.hbm [shape: bf16[16,8,256], index: 2, kind: input, shape index: {}]   ;;  %s2699_s3 = inlined_call_operand.vmem [shape: f32[1,1,128], index: 3, kind: input, shape index: {}]   ;;  %s2700_s4 = inlined_call_operand.<no memory space> [shape: f32[1], index: 4, kind: input, shape index: {}]   ;;  %s2701_s5 = inlined_call_operand.vmem [shape: f32[16,1,1], index: 5, kind: output, shape index: {}]  }
   0x1   :  { %2707 = sst [smem:[#allocation26_spill]] %s2699_s3  ;;  %s10_s20 = sshll.u32 %s2696_s0, 4  ;;  %s11_s20 = int_to_ptr.vmem [resolvable:$true] %s10_s20 }
   0x2   :  { %2708 = sst [smem:[#allocation27_spill]] %s2701_s5  ;;  %s2041_s23 = scalar_lea.vmem %s11_s20, 16 }
   0x3   :  { %14 = sst [smem:[#allocation6]] %s2700_s4  ;;  %p2042_p0 = scmp.ne.s32.totalorder %s11_s20, %s2041_s23 }
   0x4   :  { %p2046_p1 = scmp.lt.s32.totalorder %s11_s20, %s11_s20  ;;  %p2047_p2 = scmp.lt.s32.totalorder %s2041_s23, %s2041_s23 }
   0x6   :  { %p2048_p3 = por %p2047_p2, %p2046_p1 }
   0x8   :  { %p2049_p4 = pnand %p2048_p3, %p2042_p0 }
   0xa   :  { %2052 = shalt.err (!%p2049_p4)  }
   0xb   :  { %s2179_s24 = smov [#allocation5]  }
   0xc   :  { %13 = dma.vmem_to_smem %s11_s20, 16, %s2179_s24, [#allocation4] }
   0xd   :  { %2125 = dma.done.wait [#allocation4], 16 }
   0xe   :  { %2126 = vsyncadd [#allocation4], 4294967280 }
   0xf   :  { %16 = sfence }
  0x10   :  { %17 = vsyncpa [#allocation8], 0 }
  0x11   :  { %19 = vsyncpa [#allocation8 + $0x1], 0 }
  0x12   :  { %20 = vsyncpa [#allocation10], 0 }
  0x13   :  { %22 = vsyncpa [#allocation10 + $0x1], 0  ;;  %s2230_s0 = smov 0   ;;  %s2232_s4 = smov 0  }
  0x14   :  { %s2234_s25 = smov 0   ;;  %s2236_s26 = smov 0  }
  0x15   :  { %s2238_s27 = smov 0   ;;  %s2240_s28 = smov 0  }
  0x16   :  { %s2242_s29 = smov 0   ;;  %s2244_s30 = smov 0  }
  0x17   :  { %s2246_s6 = smov 0   ;;  %s2248_s7 = smov 0  }
  0x18   :  { %s2250_s8 = smov 0  }
  0x19 LB: > { %2709 = sst [smem:[#allocation19_spill]] %s2141_s4  ;;  %s37_s9 = sadd.s32 1, %s2169_s6  ;;  %s2177_s8 = sphi %s2250_s8, %s28_s8   ;;  %s2173_s7 = sphi %s2248_s7, %s2745_s7   ;;  %s2169_s6 = sphi %s2246_s6, %s2744_s6   ;;  %s2165_s30 = sphi %s2244_s30, %s2743_s30   ;;  %s2161_s29 = sphi %s2242_s29, %s2742_s29   ;;  %s2157_s28 = sphi %s2240_s28, %s2741_s28   ;;  %s2153_s27 = sphi %s2238_s27, %s2740_s27   ;;  %s2149_s26 = sphi %s2236_s26, %s2739_s26   ;;  %s2145_s25 = sphi %s2234_s25, %s2738_s25   ;;  %s2141_s4 = sphi %s2232_s4, %s2737_s4   ;;  %s2137_s0 = sphi %s2230_s0, %s2732_s0  }
  0x1a   : > { %2710 = sst [smem:[#allocation20_spill]] %s2161_s29  ;;  %p2284_p5 = scmp.ge.s32.totalorder %s37_s9, 2 }
  0x1b   : > { %2711 = sst [smem:[#allocation21_spill]] %s2165_s30  ;;  %s40_s11 = sadd.s32 1, %s2173_s7 }
  0x1c   : > { %s44_s12 = sld [smem:[#allocation5 + %s2173_s7]]  ;;  %s1513_s13 = sadd.s32 4294967295, %s2177_s8  }
  0x1d   : > { %s2747_s11 = smov (!%p2284_p5, %s40_s11), %s2173_s7  ;;  %p64_p6 = scmp.ne.s32.totalorder %s2157_s28, %s2153_s27 }
  0x1e   : > { %p65_p7 = scmp.eq.s32.totalorder %s2177_s8, 0  ;;  %p42_p8 = scmp.ge.s32.totalorder %s2747_s11, 2 }
  0x1f   : > { %p70_p9 = scmp.ne.s32.totalorder %s2153_s27, %s2149_s26  ;;  %p2304_p11 = scmp.eq.s32.totalorder %s1513_s13, 0 }
  0x20   : > { %p2300_p10 = por %p65_p7, %p64_p6  ;;  %s2749_s11 = smov (%p42_p8, %s2747_s11), 0 }
  0x21   : > { %2715 = sst [smem:[#allocation22_spill]] %s2749_s11  ;;  %p2312_p12 = por %p2304_p11, %p70_p9 }
  0x22   : > { %s1515_s16 = sadd.s32 4294967295, %s44_s12  ;;  %s48_s18 = sld [smem:[#allocation5 + %s2749_s11]] }
  0x23   : > { %s57_s19 = sadd.s32 1, %s2157_s28  ;;  %p46_p13 = scmp.lt.s32.totalorder %s2169_s6, %s1515_s16 }
  0x24   : > { %s80_s20 = sld [smem:[#allocation5 + %s2173_s7]]  ;;  %s2751_s9 = smov (%p2284_p5, %s37_s9), 0 }
  0x25   : > { %2717 = sst [smem:[#allocation23_spill]] %s2751_s9  ;;  %s52_s21 = ssub.s32 %s2173_s7, %s2749_s11 }
  0x26   : > { %s84_s22 = sld [smem:[#allocation5 + %s2749_s11]]  ;;  %p100_p0 = scmp.ne.s32.totalorder %s2145_s25, %s2141_s4 }
  0x27   : > { %p106_p1 = scmp.ne.s32.totalorder %s2141_s4, %s2137_s0  ;;  %p1520_p9 = scmp.ge.s32.totalorder %s2177_s8, 4 }
  0x28   : > { %s47_s23 = scalar_select %p46_p13, %s2169_s6, %s1515_s16 }
  0x29   : > { %s1516_s24 = sadd.s32 4294967295, %s48_s18  ;;  %p2334_p2 = por %p100_p0, %p65_p7 }
  0x2a   : > { %p50_p3 = scmp.lt.s32.totalorder %s2751_s9, %s1516_s24  ;;  %s1517_s10 = sadd.s32 4294967295, %s80_s20 }
  0x2b   : > { %p82_p4 = scmp.lt.s32.totalorder %s2169_s6, %s1517_s10  ;;  %p2342_p5 = por %p106_p1, %p2304_p11 }
  0x2c   : > { %s51_s13 = scalar_select %p50_p3, %s2751_s9, %s1516_s24 }
  0x2d   : > { %s2719_s12 = scalar_select %p2342_p5, 1, 0 }
  0x2e   : > { %s83_s0 = scalar_select %p82_p4, %s2169_s6, %s1517_s10 }
  0x2f   : > { %s53_s11 = ssub.s32 %s47_s23, %s51_s13  ;;  %s1518_s16 = sadd.s32 4294967295, %s84_s22 }
  0x30   : > { %s54_s18 = sor.u32 %s53_s11, %s52_s21  ;;  %p86_p6 = scmp.lt.s32.totalorder %s2751_s9, %s1518_s16 }
  0x31   : > { %p55_p7 = scmp.eq.s32.totalorder %s54_s18, 0  ;;  %s93_s20 = sadd.s32 1, %s2145_s25 }
  0x32   : > { %s87_s3 = scalar_select %p86_p6, %s2751_s9, %s1518_s16 }
  0x33   : > { %s2351_s29 = scalar_select %p55_p7, %s2157_s28, %s57_s19  }
  0x34   : > { %s89_s5 = ssub.s32 %s83_s0, %s87_s3  ;;  %200 = sbr.rel (%p1520_p9) target bundleno = 120 (0x78), region = 24 }
  0x35   : > { %2720 = sst [smem:[#allocation24_spill]] %s2351_s29  ;;  %s90_s30 = sor.u32 %s89_s5, %s52_s21 }
  0x36   : > { %p91_p8 = scmp.eq.s32.totalorder %s90_s30, 0 }
  0x38   : > { %s2355_s4 = scalar_select %p91_p8, %s2145_s25, %s93_s20  }
  0x3a   : > { %2721 = sst [smem:[#allocation25_spill]] %s2355_s4 }
  0x3b   : > { %s2704_s3 = sand.u32 1, %s2157_s28   ;;  %s1608_s21 = sshll.u32 %s2173_s7, 8 }
  0x3c   : > { %s1521_s5 = sshll.u32 %s2704_s3, 9  ;;  %s2180_s23 = smov 2048  }
  0x3d   : > { %s1842_s30 = scalar_select %p2300_p10, [#allocation5], [#allocation13] }
  0x3e   : > { %s1843_s11 = scalar_select %p2300_p10, %s2173_s7, 0 }
  0x3f   : > { %s1844_s15 = scalar_select %p2300_p10, [#allocation0], [#allocation14] }
  0x40   : > { %s209_s19 = sld [smem:[%s1842_s30 + %s1843_s11]]  ;;  %s2181_s24 = smov 1024  }
  0x41   : > { %s226_s22 = sld [smem:[%s1844_s15]]   ;;  %s2182_s10 = smov 16  }
  0x42   : > { %1845 = sst [smem:[#allocation12]] (%p2300_p10), %s2180_s23  ;;  %s2183_s13 = smov 64  }
  0x43   : > { %1846 = sst [smem:[#allocation12 + $0x1]] (%p2300_p10), %s2181_s24  ;;  %s208_s16 = scalar_lea.vmem [#allocation7], %s1521_s5 }
  0x44   : > { %1847 = sst [smem:[#allocation12 + $0x2]] (%p2300_p10), %s2182_s10  ;;  %s234_s18 = sshll.u32 %s208_s16, 4  ;;  %s235_s18 = int_to_ptr.vmem [resolvable:$true] %s234_s18 }
  0x45   : > { %1848 = sst [smem:[#allocation12 + $0x3]] (%p2300_p10), %s2183_s13  ;;  %s2184_s30 = smov 4  }
  0x46   : > { %s1522_s0 = sadd.s32 4294967295, %s209_s19  ;;  %1849 = sst [smem:[#allocation12 + $0x4]] (%p2300_p10), %s2183_s13 }
  0x47   : > { %p211_p11 = scmp.lt.s32.totalorder %s2169_s6, %s1522_s0  ;;  %s1527_s20 = sshll.u32 %s226_s22, 26 }
  0x48   : > { %1850 = sst [smem:[#allocation12 + $0x5]] (%p2300_p10), %s2184_s30  ;;  %s1528_s23 = sadd.s32 134217728, %s1527_s20 }
  0x49   : > { %s212_s11 = scalar_select %p211_p11, %s2169_s6, %s1522_s0 }
  0x4a   : > { %s2722_s29 = sand.u32 1, %s2157_s28   ;;  %s2185_s4 = smov [#allocation11]  }
  0x4b   : > { %s1524_s15 = sshll.u32 %s212_s11, 4  ;;  %s205_s13 = scalar_lea.sflag [#allocation8], %s2722_s29 }
  0x4c   : > { %s219_s24 = sadd.s32 %s1608_s21, %s1524_s15  ;;  %s257_s5 = sand.u32 1, %s2145_s25  }
  0x4d   : > { %s1526_s10 = sshll.u32 %s219_s24, 6  ;;  %s1529_s3 = sshll.u32 %s257_s5, 5 }
  0x4e   : > { %s221_s19 = scalar_lea.hbm %s2697_s1, %s1526_s10  ;;  %s1609_s29 = sshll.u32 %s2173_s7, 4 }
  0x4f   : > { %1851 = dma.general (%p2300_p10), %s221_s19, 8192, %s235_s18, %s205_s13, %s2185_s4, [#allocation12], %s1528_s23, 0  }
  0x50   : > { %s1852_s21 = scalar_select %p2334_p2, [#allocation5], [#allocation15] }
  0x51   : > { %s1853_s22 = scalar_select %p2334_p2, %s2173_s7, 0 }
  0x52   : > { %s261_s14 = scalar_lea.vmem [#allocation9], %s1529_s3  ;;  %s2406_s23 = scalar_lea.sflag [#allocation10], %s257_s5 }
  0x53   : > { %s262_s9 = sld [smem:[%s1852_s21 + %s1853_s22]]  ;;  %s274_s4 = sshll.u32 %s261_s14, 4  ;;  %s2399_s4 = int_to_ptr.vmem [resolvable:$true] %s274_s4 }
  0x54   : > { %s2057_s13 = scalar_lea.hbm %s2698_s2, 2048 }
  0x59   : > { %s1530_s0 = sadd.s32 4294967295, %s262_s9 }
  0x5a   : > { %p264_p13 = scmp.lt.s32.totalorder %s2169_s6, %s1530_s0 }
  0x5c   : > { %s265_s16 = scalar_select %p264_p13, %s2169_s6, %s1530_s0 }
  0x5e   : > { %s271_s18 = sadd.s32 %s1609_s29, %s265_s16 }
  0x5f   : > { %s1533_s20 = sshll.u32 %s271_s18, 6 }
  0x60   : > { %s2404_s15 = scalar_lea.hbm %s2698_s2, %s1533_s20 }
  0x61   : > { %s2053_s24 = scalar_lea.hbm %s2404_s15, 512  ;;  %p2058_p3 = scmp.lt.u32.totalorder %s2404_s15, %s2698_s2 }
  0x62   : > { %p2054_p10 = scmp.ne.s32.totalorder %s2404_s15, %s2053_s24  ;;  %p2059_p4 = scmp.lt.u32.totalorder %s2057_s13, %s2053_s24 }
  0x63   : > { %p2061_p7 = scmp.lt.u32.totalorder %s2053_s24, %s2404_s15 }
  0x64   : > { %p2055_p0 = pnand %p2054_p10, %p2334_p2  ;;  %p2060_p6 = por %p2059_p4, %p2058_p3 }
  0x66   : > { %p2056_p1 = pneg %p2055_p0  ;;  %p2062_p8 = por %p2061_p7, %p2060_p6 }
  0x68   : > { %p2063_p9 = pnand %p2062_p8, %p2056_p1 }
  0x6a   : > { %2066 = shalt.err (!%p2063_p9)
}
  0x6b   : > { %s2067_s5 = scalar_lea.vmem %s2399_s4, 512  ;;  %s2186_s9 = smov [#allocation9]  }
  0x6c   : > { %p2068_p11 = scmp.ne.s32.totalorder %s2399_s4, %s2067_s5  ;;  %s2071_s3 = sshll.u32 %s2186_s9, 4  ;;  %s2072_s3 = int_to_ptr.vmem [resolvable:$false] %s2071_s3 }
  0x6d   : > { %s2073_s0 = scalar_lea.vmem %s2072_s3, 1024  ;;  %p2074_p0 = scmp.lt.s32.totalorder %s2399_s4, %s2072_s3 }
  0x6e   : > { %p2069_p13 = pnand %p2068_p11, %p2334_p2  ;;  %p2075_p5 = scmp.lt.s32.totalorder %s2073_s0, %s2067_s5 }
  0x70   : > { %p2070_p10 = pneg %p2069_p13  ;;  %p2076_p3 = por %p2075_p5, %p2074_p0 }
  0x72   : > { %p2077_p4 = pnand %p2076_p3, %p2070_p10 }
  0x74   : > { %2080 = shalt.err (!%p2077_p4)
}
  0x75   : > { %s2187_s29 = smov 128   ;;  %s2188_s14 = smov 64  }
  0x76   : > { %s2189_s16 = smov 4  }
  0x77   : > { %1854 = dma.hbm_to_vmem [thread:$0]  (%p2334_p2), %s2404_s15, 512, %s2399_s4, %s2406_s23, %s2187_s29, %s2188_s14, %s2189_s16  }
  0x78 PF: > { %p1534_p1 = scmp.ge.s32.totalorder %s2177_s8, 1  ;;  %p282_p6 = scmp.lt.s32.totalorder %s2177_s8, 5 }
  0x7a   : > { %p283_p7 = pnand %p1534_p1, %p282_p6 }
  0x7b   : > { %s288_s18 = sand.u32 (!%p283_p7), 1, %s2153_s27  }
  0x7c   : > { %286 = sbr.rel (%p283_p7) target bundleno = 832 (0x340), region = 36  ;;  %s1535_s20 = sshll.u32 (!%p283_p7), %s288_s18, 9 }
  0x7d   : > { %s289_s30 = scalar_lea.sflag (!%p283_p7), [#allocation8], %s288_s18  ;;  %s2433_s11 = scalar_lea.vmem (!%p283_p7), [#allocation7], %s1535_s20 }
  0x83   : > { %2128 = dma.done.wait (%p2312_p12), %s289_s30, 8192  }
  0x84   : > { %2130 = vsyncadd (%p2312_p12), %s289_s30, 4294959104  ;;  %s2723_s26 = sld [smem:[#allocation19_spill]]  ;;  %p2724_p2 = scmp.ne.s32.totalorder %s2719_s12, 0 }
  0x8a   : > { %s297_s4 = sand.u32 1, %s2723_s26  }
  0x8b   : > { %s1536_s15 = sshll.u32 %s297_s4, 5  ;;  %s298_s23 = scalar_lea.sflag [#allocation10], %s297_s4 }
  0x8c   : > { %s2440_s24 = scalar_lea.vmem [#allocation9], %s1536_s15 }
  0x8d   : > { %2132 = dma.done.wait (%p2724_p2), %s298_s23, 512  }
  0x8e   : > { %2134 = vsyncadd (%p2724_p2), %s298_s23, 4294966784  ;;  %s2725_s10 = sld [smem:[#allocation21_spill]]  ;;  %s2726_s17 = sld [smem:[#allocation27_spill]] }
  0x8f   : > { %s2727_s5 = sld [smem:[#allocation20_spill]] }
  0x94   : > { %s1537_s19 = sshll.u32 %s2725_s10, 3 }
  0x95   : > { %p342_p5 = scmp.lt.s32.totalorder %s1537_s19, 15  ;;  %p1538_p12 = scmp.ne.s32.totalorder %s2727_s5, 0 }
  0x96   : > { %vm359_vm0 = vcmask (!%p1538_p12), 7168   ;;  %v2190_v0 = vmov (!%p1538_p12), 0.0  }
  0x97   : > { %s2753_s19 = smov (!%p342_p5, %s1537_s19), 15  ;;  %350 = sbr.rel (%p1538_p12) target bundleno = 160 (0xa0), region = 48 }
  0x98   : > { %s2450_s22 = scalar_lea.vmem %s2726_s17, %s2753_s19  ;;  %351 = vst [vmem:[#allocation2] sm:$0xff] (!%p1538_p12), %v2190_v0  ;;  %352 = vst [vmem:[#allocation2 + $0x8] sm:$0xff] (!%p1538_p12), %v2190_v0 }
  0x99   : > { %353 = vst [vmem:[#allocation2 + $0x10] sm:$0xff] (!%p1538_p12), %v2190_v0  ;;  %354 = vst [vmem:[#allocation2 + $0x18] sm:$0xff] (!%p1538_p12), %v2190_v0 }
  0x9a   : > { %355 = vst [vmem:[#allocation2 + $0x20] sm:$0xff] (!%p1538_p12), %v2190_v0  ;;  %356 = vst [vmem:[#allocation2 + $0x28] sm:$0xff] (!%p1538_p12), %v2190_v0 }
  0x9b   : > { %357 = vst [vmem:[#allocation2 + $0x30] sm:$0xff] (!%p1538_p12), %v2190_v0  ;;  %358 = vst [vmem:[#allocation2 + $0x38] sm:$0xff] (!%p1538_p12), %v2190_v0 }
  0x9c   : > { %360 = vst.msk [vmem:[#allocation3] sm:$0xff] (!%p1538_p12), %vm359_vm0, %v2190_v0  ;;  %361 = vst.msk [vmem:[#allocation3 + $0x8] sm:$0xff] (!%p1538_p12), %vm359_vm0, %v2190_v0 }
  0x9d   : > { %362 = vst.msk [vmem:[#allocation3 + $0x10] sm:$0xff] (!%p1538_p12), %vm359_vm0, %v2190_v0  ;;  %363 = vst.msk [vmem:[#allocation3 + $0x18] sm:$0xff] (!%p1538_p12), %vm359_vm0, %v2190_v0 }
  0x9e   : > { %364 = vst.msk [vmem:[#allocation3 + $0x20] sm:$0xff] %vm359_vm0, %v2190_v0  ;;  %365 = vst.msk [vmem:[#allocation3 + $0x28] sm:$0xff] %vm359_vm0, %v2190_v0 }
  0x9f   : > { %366 = vst.msk [vmem:[#allocation3 + $0x30] sm:$0xff] %vm359_vm0, %v2190_v0  ;;  %367 = vst.msk [vmem:[#allocation3 + $0x38] sm:$0xff] %vm359_vm0, %v2190_v0 }
  0xa0 PF: > { %s2728_s12 = sld [smem:[#allocation21_spill]]  ;;  %s2729_s3 = sld [smem:[#allocation20_spill]] }
  0xa6   : > { %s368_s9 = sld [smem:[#allocation5 + %s2728_s12]] }
  0xac   : > { %p1539_p8 = scmp.ge.s32.totalorder %s2729_s3, %s368_s9 }
  0xad   : > { %v1959_v1 = vld [vmem:[%s2433_s11] sm:$0xff] (!%p1539_p8)   ;;  %v2191_v2 = vmov (!%p1539_p8), 0.0   ;;  %v1961_v4 = vld [vmem:[%s2433_s11 + $0x8] sm:$0xff] (!%p1539_p8)   ;;  %vm2192_vm1 = vmmov (!%p1539_p8), 0   ;;  %v1963_v6 = vld [vmem:[%s2433_s11 + $0x10] sm:$0xff] (!%p1539_p8)   ;;  %vm1277_vm2 = vcmask (!%p1539_p8), 7168  }
  0xae   : > { %372 = sbr.rel (%p1539_p8) target bundleno = 518 (0x206), region = 52  ;;  %1682 = vmatprep.subr.bf16.mxu0 (!%p1539_p8), %v2191_v2  ;;  %1702 = vmatprep.subr.bf16.mxu1 (!%p1539_p8), %v2191_v2  ;;  %v1960_v3 = vld [vmem:[%s2433_s11 + $0x40] sm:$0xff] (!%p1539_p8)   ;;  %v1962_v5 = vld [vmem:[%s2433_s11 + $0x48] sm:$0xff] (!%p1539_p8)   ;;  %v1964_v7 = vld [vmem:[%s2433_s11 + $0x50] sm:$0xff] (!%p1539_p8)  }
  0xaf   : > { %1683 = vmatpush3.bf16.msra.mxu0 (!%p1539_p8), %v1959_v1  ;;  %1698 = vmatprep.mubr.msk.bf16.mxu0 (!%p1539_p8), %vm2192_vm1, %v2191_v2  ;;  %v1965_v8 = vld [vmem:[%s2433_s11 + $0x18] sm:$0xff] (!%p1539_p8)   ;;  %v1967_v10 = vld [vmem:[%s2433_s11 + $0x20] sm:$0xff] (!%p1539_p8)   ;;  %v1969_v13 = vld [vmem:[%s2433_s11 + $0x28] sm:$0xff] (!%p1539_p8)  }
  0xb0   : > { %1703 = vmatpush3.bf16.msra.mxu1 (!%p1539_p8), %v1960_v3  ;;  %1684 = vmatprep.subr.bf16.mxu0 (!%p1539_p8), %v2191_v2  ;;  %v1966_v9 = vld [vmem:[%s2433_s11 + $0x58] sm:$0xff] (!%p1539_p8)   ;;  %v1968_v11 = vld [vmem:[%s2433_s11 + $0x60] sm:$0xff] (!%p1539_p8)   ;;  %v1970_v15 = vld [vmem:[%s2433_s11 + $0x68] sm:$0xff] (!%p1539_p8)  }
  0xb1   : > { %1704 = vmatprep.subr.bf16.mxu1 (!%p1539_p8), %v2191_v2  ;;  %1718 = vmatprep.mubr.msk.bf16.mxu1 (!%p1539_p8), %vm2192_vm1, %v2191_v2  ;;  %v501_v12 = vld [vmem:[%s2440_s24] sm:$0xf] (!%p1539_p8)  ;;  %v502_v16 = vld [vmem:[%s2440_s24 + $0x4] sm:$0xf] (!%p1539_p8)  ;;  %v1971_v18 = vld [vmem:[%s2433_s11 + $0x30] sm:$0xff] (!%p1539_p8)  }
  0xb2   : > { %v1245_v14 = vunpack.c.l.bf16 (!%p1539_p8), %v501_v12  ;;  %v1246_v17 = vunpack.c.l.bf16 (!%p1539_p8), %v502_v16  ;;  %v1972_v19 = vld [vmem:[%s2433_s11 + $0x70] sm:$0xff] (!%p1539_p8)   ;;  %v1973_v20 = vld [vmem:[%s2433_s11 + $0x38] sm:$0xff] (!%p1539_p8)   ;;  %v1975_v22 = vld [vmem:[%s2433_s11 + $0x80] sm:$0xff] (!%p1539_p8)  }
  0xb3   : > { %1685 = vmatpush3.bf16.msra.mxu0 (!%p1539_p8), %v1961_v4  ;;  %v1974_v21 = vld [vmem:[%s2433_s11 + $0x78] sm:$0xff] (!%p1539_p8)   ;;  %v1976_v23 = vld [vmem:[%s2433_s11 + $0xc0] sm:$0xff] (!%p1539_p8)   ;;  %v2506_v24 = vld [vmem:[%s2440_s24 + $0x8] sm:$0xf] (!%p1539_p8) }
  0xb4   : > { %1705 = vmatpush3.bf16.msra.mxu1 (!%p1539_p8), %v1962_v5  ;;  %1686 = vmatprep.subr.bf16.mxu0 (!%p1539_p8), %v2191_v2  ;;  %v1247_v25 = vunpack.c.l.bf16 (!%p1539_p8), %v2506_v24  ;;  %v1977_v26 = vld [vmem:[%s2433_s11 + $0x88] sm:$0xff] (!%p1539_p8)   ;;  %v1979_v30 = vld [vmem:[%s2433_s11 + $0x90] sm:$0xff] (!%p1539_p8)   ;;  %v1981_v32 = vld [vmem:[%s2433_s11 + $0x98] sm:$0xff] (!%p1539_p8)  }
  0xb5   : > { %1706 = vmatprep.subr.bf16.mxu1 %v2191_v2  ;;  %1253 = vadd.xlane.f32.xlu0 %v1245_v14  ;;  %v1978_v27 = vld [vmem:[%s2433_s11 + $0xc8] sm:$0xff]   ;;  %v1980_v31 = vld [vmem:[%s2433_s11 + $0xd0] sm:$0xff]   ;;  %v1982_v33 = vld [vmem:[%s2433_s11 + $0xd8] sm:$0xff]  }
  0xb6   : > { %v504_v28 = vld [vmem:[%s2440_s24 + $0xc] sm:$0xf]  ;;  %1257 = vadd.xlane.f32.xlu1 %v1247_v25  ;;  %v1983_v34 = vld [vmem:[%s2433_s11 + $0xa0] sm:$0xff]   ;;  %v2531_v36 = vld [vmem:[%s2440_s24 + $0x10] sm:$0xf] }
  0xb7   : > { %1687 = vmatpush3.bf16.msra.mxu0 %v1963_v6  ;;  %v1248_v29 = vunpack.c.l.bf16 %v504_v28  ;;  %v1984_v35 = vld [vmem:[%s2433_s11 + $0xe0] sm:$0xff]   ;;  %v2534_v37 = vld [vmem:[%s2440_s24 + $0x14] sm:$0xf]  ;;  %v1985_v38 = vld [vmem:[%s2433_s11 + $0xa8] sm:$0xff]   ;;  %v1249_v40 = vunpack.c.l.bf16 %v2531_v36 }
  0xb8   : > { %1707 = vmatpush3.bf16.msra.mxu1 %v1964_v7  ;;  %1688 = vmatprep.subr.bf16.mxu0 %v2191_v2  ;;  %v1250_v39 = vunpack.c.l.bf16 %v2534_v37  ;;  %v1986_v41 = vld [vmem:[%s2433_s11 + $0xe8] sm:$0xff]   ;;  %v1987_v42 = vld [vmem:[%s2433_s11 + $0xb0] sm:$0xff]   ;;  %v1989_v44 = vld [vmem:[%s2433_s11 + $0xb8] sm:$0xff]  }
  0xb9   : > { %1708 = vmatprep.subr.bf16.mxu1 %v2191_v2  ;;  %1255 = vadd.xlane.f32.xlu0 %v1246_v17  ;;  %v1988_v43 = vld [vmem:[%s2433_s11 + $0xf0] sm:$0xff]   ;;  %v1990_v45 = vld [vmem:[%s2433_s11 + $0xf8] sm:$0xff]   ;;  %v1991_v46 = vld [vmem:[%s2433_s11 + $0x100] sm:$0xff]  }
  0xba   : > { %1259 = vadd.xlane.f32.xlu1 %v1248_v29  ;;  %v1992_v47 = vld [vmem:[%s2433_s11 + $0x140] sm:$0xff]   ;;  %v1993_v48 = vld [vmem:[%s2433_s11 + $0x108] sm:$0xff]   ;;  %v2557_v49 = vld [vmem:[%s2440_s24 + $0x18] sm:$0xf] }
  0xbb   : > { %1689 = vmatpush3.bf16.msra.mxu0 %v1965_v8  ;;  %v2560_v50 = vld [vmem:[%s2440_s24 + $0x1c] sm:$0xf]  ;;  %v1994_v51 = vld [vmem:[%s2433_s11 + $0x148] sm:$0xff]   ;;  %v1251_v53 = vunpack.c.l.bf16 %v2557_v49  ;;  %v1995_v54 = vld [vmem:[%s2433_s11 + $0x110] sm:$0xff]  }
  0xbc   : > { %1709 = vmatpush3.bf16.msra.mxu1 %v1966_v9  ;;  %1690 = vmatprep.subr.bf16.mxu0 %v2191_v2  ;;  %v1252_v52 = vunpack.c.l.bf16 %v2560_v50  ;;  %v1996_v55 = vld [vmem:[%s2433_s11 + $0x150] sm:$0xff]   ;;  %v1997_v56 = vld [vmem:[%s2433_s11 + $0x118] sm:$0xff]   ;;  %v1999_v58 = vld [vmem:[%s2433_s11 + $0x120] sm:$0xff]  }
  0xbd   : > { %1710 = vmatprep.subr.bf16.mxu1 %v2191_v2  ;;  %1261 = vadd.xlane.f32.xlu0 %v1249_v40  ;;  %v1998_v57 = vld [vmem:[%s2433_s11 + $0x158] sm:$0xff]   ;;  %v2000_v59 = vld [vmem:[%s2433_s11 + $0x160] sm:$0xff]   ;;  %v2001_v60 = vld [vmem:[%s2433_s11 + $0x128] sm:$0xff]  }
  0xbe   : > { %1263 = vadd.xlane.f32.xlu1 %v1250_v39  ;;  %v2002_v61 = vld [vmem:[%s2433_s11 + $0x168] sm:$0xff]   ;;  %v2003_v62 = vld [vmem:[%s2433_s11 + $0x130] sm:$0xff]   ;;  %v2005_v0 = vld [vmem:[%s2433_s11 + $0x138] sm:$0xff]  }
  0xbf   : > { %1691 = vmatpush3.bf16.msra.mxu0 %v1967_v10  ;;  %v2004_v63 = vld [vmem:[%s2433_s11 + $0x170] sm:$0xff]   ;;  %v2006_v1 = vld [vmem:[%s2433_s11 + $0x178] sm:$0xff]   ;;  %v2007_v3 = vld [vmem:[%s2433_s11 + $0x180] sm:$0xff]  }
  0xc0   : > { %1711 = vmatpush3.bf16.msra.mxu1 %v1968_v11  ;;  %1692 = vmatprep.subr.bf16.mxu0 %v2191_v2  ;;  %v2008_v4 = vld [vmem:[%s2433_s11 + $0x1c0] sm:$0xff]   ;;  %v2009_v5 = vld [vmem:[%s2433_s11 + $0x188] sm:$0xff]   ;;  %v2011_v7 = vld [vmem:[%s2433_s11 + $0x190] sm:$0xff]  }
  0xc1   : > { %1712 = vmatprep.subr.bf16.mxu1 %v2191_v2  ;;  %1265 = vadd.xlane.f32.xlu0 %v1251_v53  ;;  %v2010_v6 = vld [vmem:[%s2433_s11 + $0x1c8] sm:$0xff]   ;;  %v2012_v8 = vld [vmem:[%s2433_s11 + $0x1d0] sm:$0xff]   ;;  %v2013_v9 = vld [vmem:[%s2433_s11 + $0x198] sm:$0xff]  }
  0xc2   : > { %1267 = vadd.xlane.f32.xlu1 %v1252_v52  ;;  %v2014_v10 = vld [vmem:[%s2433_s11 + $0x1d8] sm:$0xff]   ;;  %v2015_v11 = vld [vmem:[%s2433_s11 + $0x1a0] sm:$0xff]   ;;  %v2018_v14 = vld [vmem:[%s2433_s11 + $0x1e8] sm:$0xff]  }
  0xc3   : > { %1693 = vmatpush3.bf16.msra.mxu0 %v1969_v13  ;;  %v2017_v13 = vld [vmem:[%s2433_s11 + $0x1a8] sm:$0xff]   ;;  %v2021_v17 = vld [vmem:[%s2433_s11 + $0x1b8] sm:$0xff]  }
  0xc4   : > { %1713 = vmatpush3.bf16.msra.mxu1 %v1970_v15  ;;  %1694 = vmatprep.subr.bf16.mxu0 %v2191_v2  ;;  %v2019_v15 = vld [vmem:[%s2433_s11 + $0x1b0] sm:$0xff]   ;;  %v1240_v25 = vld [vmem:[#allocation3 + $0x18] sm:$0xff] }
  0xc5   : > { %1714 = vmatprep.subr.bf16.mxu1 %v2191_v2 }
  0xc7   : > { %1695 = vmatpush3.bf16.msra.mxu0 %v1971_v18  ;;  %v2022_v18 = vld [vmem:[%s2433_s11 + $0x1f8] sm:$0xff]  }
  0xc8   : > { %1715 = vmatpush3.bf16.msra.mxu1 %v1972_v19  ;;  %1696 = vmatprep.subr.bf16.mxu0 %v2191_v2  ;;  %v1239_v19 = vld [vmem:[#allocation3 + $0x10] sm:$0xff] }
  0xc9   : > { %1716 = vmatprep.subr.bf16.mxu1 %v2191_v2 }
  0xcb   : > { %1697 = vmatpush3.bf16.msra.mxu0 %v1973_v20 }
  0xcc   : > { %1717 = vmatpush3.bf16.msra.mxu1 %v1974_v21  ;;  %1722 = vmatprep.subr.bf16.mxu0 %v2191_v2  ;;  %v1237_v21 = vld [vmem:[#allocation3] sm:$0xff] }
  0xcd   : > { %1742 = vmatprep.subr.bf16.mxu1 %v2191_v2 }
  0xce   : > { %1699 = vmatmul.mubr.bf16.vlgmr.msra.gmra.mrb[0].mxu0 %v501_v12  ;;  %v2016_v12 = vld [vmem:[%s2433_s11 + $0x1e0] sm:$0xff]  }
  0xcf   : > { %1719 = vmatmul.mubr.bf16.vlgmr.msra.gmra.mrb[0].mxu1 %v502_v16  ;;  %1723 = vmatpush3.bf16.msra.mxu0 %v1975_v22  ;;  %v2020_v16 = vld [vmem:[%s2433_s11 + $0x1f0] sm:$0xff]  }
  0xd0   : > { %1743 = vmatpush3.bf16.msra.mxu1 %v1976_v23  ;;  %1724 = vmatprep.subr.bf16.mxu0 %v2191_v2 }
  0xd1   : > { %1744 = vmatprep.subr.bf16.mxu1 %v2191_v2  ;;  %1738 = vmatprep.mubr.msk.bf16.mxu0 %vm2192_vm1, %v2191_v2 }
  0xd2   : > { %1758 = vmatprep.mubr.msk.bf16.mxu1 %vm2192_vm1, %v2191_v2 }
  0xd3   : > { %1725 = vmatpush3.bf16.msra.mxu0 %v1977_v26  ;;  %v1238_v26 = vld [vmem:[#allocation3 + $0x8] sm:$0xff] }
  0xd4   : > { %1745 = vmatpush3.bf16.msra.mxu1 %v1978_v27  ;;  %1726 = vmatprep.subr.bf16.mxu0 %v2191_v2 }
  0xd5   : > { %1746 = vmatprep.subr.bf16.mxu1 %v2191_v2 }
  0xd7   : > { %1727 = vmatpush3.bf16.msra.mxu0 %v1979_v30  ;;  %v1242_v30 = vld [vmem:[#allocation3 + $0x28] sm:$0xff] }
  0xd8   : > { %1747 = vmatpush3.bf16.msra.mxu1 %v1980_v31  ;;  %1728 = vmatprep.subr.bf16.mxu0 %v2191_v2  ;;  %v1241_v31 = vld [vmem:[#allocation3 + $0x20] sm:$0xff] }
  0xd9   : > { %1748 = vmatprep.subr.bf16.mxu1 %v2191_v2 }
  0xdb   : > { %1729 = vmatpush3.bf16.msra.mxu0 %v1981_v32 }
  0xdc   : > { %1749 = vmatpush3.bf16.msra.mxu1 %v1982_v33  ;;  %1730 = vmatprep.subr.bf16.mxu0 %v2191_v2 }
  0xdd   : > { %1750 = vmatprep.subr.bf16.mxu1 %v2191_v2 }
  0xdf   : > { %1731 = vmatpush3.bf16.msra.mxu0 %v1983_v34 }
  0xe0   : > { %1751 = vmatpush3.bf16.msra.mxu1 %v1984_v35  ;;  %1732 = vmatprep.subr.bf16.mxu0 %v2191_v2 }
  0xe1   : > { %1752 = vmatprep.subr.bf16.mxu1 %v2191_v2 }
  0xe3   : > { %1733 = vmatpush3.bf16.msra.mxu0 %v1985_v38 }
  0xe4   : > { %1753 = vmatpush3.bf16.msra.mxu1 %v1986_v41  ;;  %1734 = vmatprep.subr.bf16.mxu0 %v2191_v2 }
  0xe5   : > { %1754 = vmatprep.subr.bf16.mxu1 %v2191_v2 }
  0xe7   : > { %1735 = vmatpush3.bf16.msra.mxu0 %v1987_v42  ;;  %v509_v42 = vld [vmem:[#allocation2] sm:$0xff] }
  0xe8   : > { %1755 = vmatpush3.bf16.msra.mxu1 %v1988_v43  ;;  %1736 = vmatprep.subr.bf16.mxu0 %v2191_v2  ;;  %v510_v43 = vld [vmem:[#allocation2 + $0x8] sm:$0xff] }
  0xe9   : > { %1756 = vmatprep.subr.bf16.mxu1 %v2191_v2 }
  0xeb   : > { %1737 = vmatpush3.bf16.msra.mxu0 %v1989_v44 }
  0xec   : > { %1757 = vmatpush3.bf16.msra.mxu1 %v1990_v45  ;;  %1762 = vmatprep.subr.bf16.mxu0 %v2191_v2 }
  0xed   : > { %1782 = vmatprep.subr.bf16.mxu1 %v2191_v2 }
  0xee   : > { %1739 = vmatmul.mubr.bf16.vlgmr.msra.gmra.mrb[4].mxu0 %v2506_v24 }
  0xef   : > { %1759 = vmatmul.mubr.bf16.vlgmr.msra.gmra.mrb[4].mxu1 %v504_v28  ;;  %1763 = vmatpush3.bf16.msra.mxu0 %v1991_v46 }
  0xf0   : > { %1783 = vmatpush3.bf16.msra.mxu1 %v1992_v47  ;;  %1764 = vmatprep.subr.bf16.mxu0 %v2191_v2 }
  0xf1   : > { %1784 = vmatprep.subr.bf16.mxu1 %v2191_v2  ;;  %1778 = vmatprep.mubr.msk.bf16.mxu0 %vm2192_vm1, %v2191_v2 }
  0xf2   : > { %1798 = vmatprep.mubr.msk.bf16.mxu1 %vm2192_vm1, %v2191_v2 }
  0xf3   : > { %1765 = vmatpush3.bf16.msra.mxu0 %v1993_v48 }
  0xf4   : > { %1785 = vmatpush3.bf16.msra.mxu1 %v1994_v51  ;;  %1766 = vmatprep.subr.bf16.mxu0 %v2191_v2 }
  0xf5   : > { %1786 = vmatprep.subr.bf16.mxu1 %v2191_v2 }
  0xf7   : > { %1767 = vmatpush3.bf16.msra.mxu0 %v1995_v54  ;;  %v511_v54 = vld [vmem:[#allocation2 + $0x10] sm:$0xff] }
  0xf8   : > { %1787 = vmatpush3.bf16.msra.mxu1 %v1996_v55  ;;  %1768 = vmatprep.subr.bf16.mxu0 %v2191_v2  ;;  %v512_v55 = vld [vmem:[#allocation2 + $0x18] sm:$0xff] }
  0xf9   : > { %1788 = vmatprep.subr.bf16.mxu1 %v2191_v2 }
  0xfb   : > { %1769 = vmatpush3.bf16.msra.mxu0 %v1997_v56 }
  0xfc   : > { %1789 = vmatpush3.bf16.msra.mxu1 %v1998_v57  ;;  %1770 = vmatprep.subr.bf16.mxu0 %v2191_v2 }
  0xfd   : > { %1790 = vmatprep.subr.bf16.mxu1 %v2191_v2 }
  0xff   : > { %1771 = vmatpush3.bf16.msra.mxu0 %v1999_v58 }
 0x100   : > { %1791 = vmatpush3.bf16.msra.mxu1 %v2000_v59  ;;  %1772 = vmatprep.subr.bf16.mxu0 %v2191_v2 }
 0x101   : > { %1792 = vmatprep.subr.bf16.mxu1 %v2191_v2 }
 0x103   : > { %1773 = vmatpush3.bf16.msra.mxu0 %v2001_v60 }
 0x104   : > { %1793 = vmatpush3.bf16.msra.mxu1 %v2002_v61  ;;  %1774 = vmatprep.subr.bf16.mxu0 %v2191_v2 }
 0x105   : > { %1794 = vmatprep.subr.bf16.mxu1 %v2191_v2 }
 0x107   : > { %1775 = vmatpush3.bf16.msra.mxu0 %v2003_v62 }
 0x108   : > { %1795 = vmatpush3.bf16.msra.mxu1 %v2004_v63  ;;  %1776 = vmatprep.subr.bf16.mxu0 %v2191_v2 }
 0x109   : > { %1796 = vmatprep.subr.bf16.mxu1 %v2191_v2 }
 0x10b   : > { %1777 = vmatpush3.bf16.msra.mxu0 %v2005_v0 }
 0x10c   : > { %1797 = vmatpush3.bf16.msra.mxu1 %v2006_v1  ;;  %1802 = vmatprep.subr.bf16.mxu0 %v2191_v2 }
 0x10d   : > { %1822 = vmatprep.subr.bf16.mxu1 %v2191_v2 }
 0x10e   : > { %1779 = vmatmul.mubr.bf16.vlgmr.msra.gmra.mrb[8].mxu0 %v2531_v36  ;;  %v1244_v36 = vld [vmem:[#allocation3 + $0x38] sm:$0xff] }
 0x10f   : > { %1799 = vmatmul.mubr.bf16.vlgmr.msra.gmra.mrb[8].mxu1 %v2534_v37  ;;  %1803 = vmatpush3.bf16.msra.mxu0 %v2007_v3  ;;  %v1243_v37 = vld [vmem:[#allocation3 + $0x30] sm:$0xff]  ;;  %v513_v3 = vld [vmem:[#allocation2 + $0x20] sm:$0xff] }
 0x110   : > { %1823 = vmatpush3.bf16.msra.mxu1 %v2008_v4  ;;  %1804 = vmatprep.subr.bf16.mxu0 %v2191_v2  ;;  %v514_v4 = vld [vmem:[#allocation2 + $0x28] sm:$0xff] }
 0x111   : > { %1824 = vmatprep.subr.bf16.mxu1 %v2191_v2  ;;  %1818 = vmatprep.mubr.msk.bf16.mxu0 %vm2192_vm1, %v2191_v2 }
 0x112   : > { %1838 = vmatprep.mubr.msk.bf16.mxu1 %vm2192_vm1, %v2191_v2 }
 0x113   : > { %1805 = vmatpush3.bf16.msra.mxu0 %v2009_v5 }
 0x114   : > { %1825 = vmatpush3.bf16.msra.mxu1 %v2010_v6  ;;  %1806 = vmatprep.subr.bf16.mxu0 %v2191_v2 }
 0x115   : > { %1826 = vmatprep.subr.bf16.mxu1 %v2191_v2 }
 0x117   : > { %1807 = vmatpush3.bf16.msra.mxu0 %v2011_v7 }
 0x118   : > { %1827 = vmatpush3.bf16.msra.mxu1 %v2012_v8  ;;  %1808 = vmatprep.subr.bf16.mxu0 %v2191_v2 }
 0x119   : > { %1828 = vmatprep.subr.bf16.mxu1 %v2191_v2 }
 0x11b   : > { %1809 = vmatpush3.bf16.msra.mxu0 %v2013_v9 }
 0x11c   : > { %1829 = vmatpush3.bf16.msra.mxu1 %v2014_v10  ;;  %1810 = vmatprep.subr.bf16.mxu0 %v2191_v2 }
 0x11d   : > { %1830 = vmatprep.subr.bf16.mxu1 %v2191_v2 }
 0x11f   : > { %1811 = vmatpush3.bf16.msra.mxu0 %v2015_v11 }
 0x120   : > { %1831 = vmatpush3.bf16.msra.mxu1 %v2016_v12  ;;  %1812 = vmatprep.subr.bf16.mxu0 %v2191_v2 }
 0x121   : > { %1832 = vmatprep.subr.bf16.mxu1 %v2191_v2 }
 0x123   : > { %1813 = vmatpush3.bf16.msra.mxu0 %v2017_v13 }
 0x124   : > { %1833 = vmatpush3.bf16.msra.mxu1 %v2018_v14  ;;  %1814 = vmatprep.subr.bf16.mxu0 %v2191_v2 }
 0x125   : > { %1834 = vmatprep.subr.bf16.mxu1 %v2191_v2 }
 0x127   : > { %1815 = vmatpush3.bf16.msra.mxu0 %v2019_v15  ;;  %v515_v15 = vld [vmem:[#allocation2 + $0x30] sm:$0xff] }
 0x128   : > { %1835 = vmatpush3.bf16.msra.mxu1 %v2020_v16  ;;  %1816 = vmatprep.subr.bf16.mxu0 %v2191_v2  ;;  %v516_v16 = vld [vmem:[#allocation2 + $0x38] sm:$0xff] }
 0x129   : > { %1836 = vmatprep.subr.bf16.mxu1 %v2191_v2 }
 0x12b   : > { %1817 = vmatpush3.bf16.msra.mxu0 %v2021_v17 }
 0x12c   : > { %1837 = vmatpush3.bf16.msra.mxu1 %v2022_v18 }
 0x12e   : > { %1819 = vmatmul.mubr.bf16.vlgmr.msra.gmra.mrb[12].mxu0 %v2557_v49 }
 0x12f   : > { %1839 = vmatmul.mubr.bf16.vlgmr.msra.gmra.mrb[12].mxu1 %v2560_v50 }
 0x142   : > { %v1254_v22 = vpop.xlane.xlu0 %1253 }
 0x143   : > { %v1258_v20 = vpop.xlane.xlu1 %1257  ;;  %v1269_v24 = vadd.f32 %v1254_v22, %v1237_v21 }
 0x144   : > { %v1271_v23 = vadd.f32 %v1258_v20, %v1239_v19 }
 0x145   : > { %1278 = vst.msk [vmem:[#allocation3] sm:$0xff] %vm1277_vm2, %v1269_v24 }
 0x146   : > { %1280 = vst.msk [vmem:[#allocation3 + $0x10] sm:$0xff] %vm1277_vm2, %v1271_v23  ;;  %v1256_v27 = vpop.xlane.xlu0 %1255 }
 0x147   : > { %v1260_v2 = vpop.xlane.xlu1 %1259  ;;  %v1270_v29 = vadd.f32 %v1256_v27, %v1238_v26 }
 0x148   : > { %v1272_v28 = vadd.f32 %v1260_v2, %v1240_v25 }
 0x149   : > { %1279 = vst.msk [vmem:[#allocation3 + $0x8] sm:$0xff] %vm1277_vm2, %v1270_v29 }
 0x14a   : > { %1281 = vst.msk [vmem:[#allocation3 + $0x18] sm:$0xff] %vm1277_vm2, %v1272_v28  ;;  %v1262_v34 = vpop.xlane.xlu0 %1261 }
 0x14b   : > { %v1264_v32 = vpop.xlane.xlu1 %1263  ;;  %v1273_v35 = vadd.f32 %v1262_v34, %v1241_v31 }
 0x14c   : > { %v1274_v33 = vadd.f32 %v1264_v32, %v1242_v30 }
 0x14d   : > { %1282 = vst.msk [vmem:[#allocation3 + $0x20] sm:$0xff] %vm1277_vm2, %v1273_v35 }
 0x14e   : > { %1283 = vst.msk [vmem:[#allocation3 + $0x28] sm:$0xff] %vm1277_vm2, %v1274_v33  ;;  %v1266_v40 = vpop.xlane.xlu0 %1265 }
 0x14f   : > { %v1268_v38 = vpop.xlane.xlu1 %1267  ;;  %v1275_v41 = vadd.f32 %v1266_v40, %v1243_v37 }
 0x150   : > { %v1276_v39 = vadd.f32 %v1268_v38, %v1244_v36 }
 0x151   : > { %1284 = vst.msk [vmem:[#allocation3 + $0x30] sm:$0xff] %vm1277_vm2, %v1275_v41 }
 0x152   : > { %1285 = vst.msk [vmem:[#allocation3 + $0x38] sm:$0xff] %vm1277_vm2, %v1276_v39 }
 0x1a1   : > { %v599_v44 = vpop.f32.mrb[0].mxu0 }
 0x1a2   : > { %v1221_v45 = vadd.f32 %v599_v44, %v509_v42  ;;  %v687_v46 = vpop.f32.mrb[0].mxu1  ;;  %v1700_v47 = vpop.f32.mrb[1].mxu0 }
 0x1a3   : > { %v1222_v48 = vadd.f32 %v687_v46, %v510_v43  ;;  %v1720_v49 = vpop.f32.mrb[1].mxu1  ;;  %v602_v50 = vpop.f32.mrb[2].mxu0 }
 0x1a4   : > { %1229 = vst [vmem:[#allocation2] sm:$0xff] %v1221_v45  ;;  %v690_v51 = vpop.f32.mrb[2].mxu1  ;;  %v1701_v52 = vpop.f32.mrb[3].mxu0 }
 0x1a5   : > { %1230 = vst [vmem:[#allocation2 + $0x8] sm:$0xff] %v1222_v48  ;;  %v1721_v53 = vpop.f32.mrb[3].mxu1 }
 0x1c1   : > { %v775_v56 = vpop.f32.mrb[4].mxu0 }
 0x1c2   : > { %v1223_v57 = vadd.f32 %v775_v56, %v511_v54  ;;  %v863_v58 = vpop.f32.mrb[4].mxu1  ;;  %v1740_v59 = vpop.f32.mrb[5].mxu0 }
 0x1c3   : > { %v1224_v60 = vadd.f32 %v863_v58, %v512_v55  ;;  %v1760_v61 = vpop.f32.mrb[5].mxu1  ;;  %v778_v62 = vpop.f32.mrb[6].mxu0 }
 0x1c4   : > { %1231 = vst [vmem:[#allocation2 + $0x10] sm:$0xff] %v1223_v57  ;;  %v866_v63 = vpop.f32.mrb[6].mxu1  ;;  %v1741_v0 = vpop.f32.mrb[7].mxu0 }
 0x1c5   : > { %1232 = vst [vmem:[#allocation2 + $0x18] sm:$0xff] %v1224_v60  ;;  %v1761_v1 = vpop.f32.mrb[7].mxu1 }
 0x1e1   : > { %v951_v5 = vpop.f32.mrb[8].mxu0 }
 0x1e2   : > { %v1225_v6 = vadd.f32 %v951_v5, %v513_v3  ;;  %v1039_v7 = vpop.f32.mrb[8].mxu1  ;;  %v1780_v8 = vpop.f32.mrb[9].mxu0 }
 0x1e3   : > { %v1226_v9 = vadd.f32 %v1039_v7, %v514_v4  ;;  %v1800_v10 = vpop.f32.mrb[9].mxu1  ;;  %v954_v11 = vpop.f32.mrb[10].mxu0 }
 0x1e4   : > { %1233 = vst [vmem:[#allocation2 + $0x20] sm:$0xff] %v1225_v6  ;;  %v1042_v12 = vpop.f32.mrb[10].mxu1  ;;  %v1781_v13 = vpop.f32.mrb[11].mxu0 }
 0x1e5   : > { %1234 = vst [vmem:[#allocation2 + $0x28] sm:$0xff] %v1226_v9  ;;  %v1801_v14 = vpop.f32.mrb[11].mxu1 }
 0x201   : > { %v1127_v17 = vpop.f32.mrb[12].mxu0 }
 0x202   : > { %v1227_v18 = vadd.f32 %v1127_v17, %v515_v15  ;;  %v1215_v19 = vpop.f32.mrb[12].mxu1  ;;  %v1820_v20 = vpop.f32.mrb[13].mxu0 }
 0x203   : > { %v1228_v21 = vadd.f32 %v1215_v19, %v516_v16  ;;  %v1840_v22 = vpop.f32.mrb[13].mxu1  ;;  %v1130_v23 = vpop.f32.mrb[14].mxu0 }
 0x204   : > { %1235 = vst [vmem:[#allocation2 + $0x30] sm:$0xff] %v1227_v18  ;;  %v1218_v24 = vpop.f32.mrb[14].mxu1  ;;  %v1821_v25 = vpop.f32.mrb[15].mxu0 }
 0x205   : > { %1236 = vst [vmem:[#allocation2 + $0x38] sm:$0xff] %v1228_v21  ;;  %v1841_v26 = vpop.f32.mrb[15].mxu1 }
 0x206 PF: > { %s2730_s0 = sld [smem:[#allocation20_spill]] }
 0x20c   : > { %p1604_p9 = scmp.ne.s32.totalorder %s2730_s0, 1 }
 0x20d   : > { %v1300_v2 = vld [vmem:[#allocation3 + $0x10] sm:$0xff] (!%p1604_p9)  ;;  %v1298_v27 = vld [vmem:[#allocation3] sm:$0xff] (!%p1604_p9)  ;;  %v2193_v28 = vmov (!%p1604_p9), 0   ;;  %v1301_v29 = vld [vmem:[#allocation3 + $0x18] sm:$0xff] (!%p1604_p9)  ;;  %s2731_s16 = sld [smem:[#allocation26_spill]] (!%p1604_p9)  ;;  %vm1403_vm3 = vcmask (!%p1604_p9), 0  }
 0x20e   : > { %1289 = sbr.rel (%p1604_p9) target bundleno = 832 (0x340), region = 56  ;;  %2024 = vset.pattern.permute.xlu1 (!%p1604_p9), %v2193_v28  ;;  %2023 = vset.pattern.permute.xlu0 (!%p1604_p9), %v2193_v28  ;;  %v1299_v30 = vld [vmem:[#allocation3 + $0x8] sm:$0xff] (!%p1604_p9)  ;;  %v1302_v32 = vld [vmem:[#allocation3 + $0x20] sm:$0xff] (!%p1604_p9)  ;;  %v1305_v33 = vld [vmem:[#allocation3 + $0x38] sm:$0xff] (!%p1604_p9)  ;;  %s1393_s18 = sld [smem:[#allocation6]] (!%p1604_p9) }
 0x20f   : > { %1318 = vperm.xlu1 (!%p1604_p9), %2024, %v1300_v2   ;;  %1308 = vperm.xlu0 (!%p1604_p9), %2023, %v1298_v27   ;;  %v1303_v31 = vld [vmem:[#allocation3 + $0x28] sm:$0xff] (!%p1604_p9)  ;;  %v1304_v34 = vld [vmem:[#allocation3 + $0x30] sm:$0xff] (!%p1604_p9)  ;;  %v1290_v41 = vld [vmem:[#allocation2] sm:$0xff] (!%p1604_p9) }
 0x210   : > { %v1292_v42 = vld [vmem:[#allocation2 + $0x10] sm:$0xff] (!%p1604_p9)  ;;  %v1291_v50 = vld [vmem:[#allocation2 + $0x8] sm:$0xff] (!%p1604_p9)  ;;  %v1293_v54 = vld [vmem:[#allocation2 + $0x18] sm:$0xff] (!%p1604_p9) }
 0x211   : > { %v1294_v57 = vld [vmem:[#allocation2 + $0x20] sm:$0xff] (!%p1604_p9)  ;;  %v1295_v62 = vld [vmem:[#allocation2 + $0x28] sm:$0xff] (!%p1604_p9)  ;;  %v1296_v0 = vld [vmem:[#allocation2 + $0x30] sm:$0xff] (!%p1604_p9) }
 0x212   : > { %v1297_v7 = vld [vmem:[#allocation2 + $0x38] sm:$0xff] (!%p1604_p9) }
 0x213   : > { %1323 = vperm.xlu1 (!%p1604_p9), %2024, %v1301_v29   ;;  %1313 = vperm.xlu0 (!%p1604_p9), %2023, %v1299_v30   ;;  %v1605_v47 = vld [vmem:[%s2731_s16] ss:$0 sm:$0xff] (!%p1604_p9) }
 0x214   : > { %v1394_v13 = vstv (!%p1604_p9), %s1393_s18 }
 0x217   : > { %1333 = vperm.xlu1 %2024, %v1303_v31   ;;  %1328 = vperm.xlu0 %2023, %v1302_v32  }
 0x21b   : > { %1343 = vperm.xlu1 %2024, %v1305_v33   ;;  %1338 = vperm.xlu0 %2023, %v1304_v34  }
 0x28e   : > { %v1319_v35 = vpop.permute.xlu1 %1318  ;;  %v1309_v36 = vpop.permute.xlu0 %1308 }
 0x28f   : > { %2025 = vrcp.f32 %v1319_v35 }
 0x290   : > { %2027 = vrcp.f32 %v1309_v36 }
 0x292   : > { %v1324_v37 = vpop.permute.xlu1 %1323  ;;  %v1314_v38 = vpop.permute.xlu0 %1313 }
 0x293   : > { %2029 = vrcp.f32 %v1324_v37 }
 0x294   : > { %2031 = vrcp.f32 %v1314_v38 }
 0x296   : > { %v1334_v39 = vpop.permute.xlu1 %1333  ;;  %v1329_v40 = vpop.permute.xlu0 %1328 }
 0x297   : > { %2033 = vrcp.f32 %v1334_v39 }
 0x298   : > { %2035 = vrcp.f32 %v1329_v40 }
 0x299   : > { %v2026_v43 = vpop.eup %2025 }
 0x29a   : > { %v2028_v44 = vpop.eup %2027  ;;  %v1344_v45 = vpop.permute.xlu1 %1343  ;;  %v1351_v49 = vmul.f32 %v2026_v43, %v1292_v42 }
 0x29b   : > { %v1339_v46 = vpop.permute.xlu0 %1338  ;;  %2037 = vrcp.f32 %v1344_v45  ;;  %v1347_v48 = vmul.f32 %v2028_v44, %v1290_v41 }
 0x29c   : > { %2039 = vrcp.f32 %v1339_v46  ;;  %v1371_v56 = vmul.f32 %v1605_v47, %v1351_v49 }
 0x29d   : > { %v2030_v51 = vpop.eup %2029  ;;  %v1369_v52 = vmul.f32 %v1605_v47, %v1347_v48 }
 0x29e   : > { %v2032_v53 = vpop.eup %2031  ;;  %v1353_v60 = vmul.f32 %v2030_v51, %v1293_v54 }
 0x29f   : > { %1377 = vadd.xlane.f32.xlu0 %v1369_v52  ;;  %v1349_v55 = vmul.f32 %v2032_v53, %v1291_v50 }
 0x2a0   : > { %v1372_v4 = vmul.f32 %v1605_v47, %v1353_v60 }
 0x2a1   : > { %v2034_v58 = vpop.eup %2033  ;;  %v1370_v59 = vmul.f32 %v1605_v47, %v1349_v55 }
 0x2a2   : > { %v2036_v61 = vpop.eup %2035  ;;  %v1357_v5 = vmul.f32 %v2034_v58, %v1295_v62 }
 0x2a3   : > { %1379 = vadd.xlane.f32.xlu1 %v1370_v59  ;;  %1381 = vadd.xlane.f32.xlu0 %v1371_v56  ;;  %v1355_v63 = vmul.f32 %v2036_v61, %v1294_v57 }
 0x2a4   : > { %v1374_v10 = vmul.f32 %v1605_v47, %v1357_v5 }
 0x2a5   : > { %v2038_v1 = vpop.eup %2037  ;;  %v1373_v3 = vmul.f32 %v1605_v47, %v1355_v63 }
 0x2a6   : > { %v2040_v6 = vpop.eup %2039  ;;  %v1361_v11 = vmul.f32 %v2038_v1, %v1297_v7 }
 0x2a7   : > { %1385 = vadd.xlane.f32.xlu1 %v1373_v3  ;;  %1383 = vadd.xlane.f32.xlu0 %v1372_v4  ;;  %v1359_v8 = vmul.f32 %v2040_v6, %v1296_v0 }
 0x2a8   : > { %v1376_v12 = vmul.f32 %v1605_v47, %v1361_v11 }
 0x2a9   : > { %v1375_v9 = vmul.f32 %v1605_v47, %v1359_v8 }
 0x2ab   : > { %1389 = vadd.xlane.f32.xlu1 %v1375_v9  ;;  %1387 = vadd.xlane.f32.xlu0 %v1374_v10 }
 0x2af   : > { %1391 = vadd.xlane.f32.xlu0 %v1376_v12 }
 0x32c   : > { %v1378_v14 = vpop.xlane.xlu0 %1377 }
 0x32d   : > { %v1395_v15 = vadd.f32 %v1394_v13, %v1378_v14 }
 0x32f   : > { %1404 = vst.msk [vmem:[%s2450_s22] sm:$0x1] %vm1403_vm3, %v1395_v15 }
 0x330   : > { %v1380_v16 = vpop.xlane.xlu1 %1379  ;;  %v1382_v17 = vpop.xlane.xlu0 %1381 }
 0x331   : > { %v1396_v18 = vadd.f32 %v1394_v13, %v1380_v16  ;;  %v1397_v19 = vadd.f32 %v1394_v13, %v1382_v17 }
 0x333   : > { %1405 = vst.msk [vmem:[%s2450_s22 + $0x1] sm:$0x1] %vm1403_vm3, %v1396_v18  ;;  %1406 = vst.msk [vmem:[%s2450_s22 + $0x2] sm:$0x1] %vm1403_vm3, %v1397_v19 }
 0x334   : > { %v1386_v20 = vpop.xlane.xlu1 %1385  ;;  %v1384_v21 = vpop.xlane.xlu0 %1383 }
 0x335   : > { %v1399_v22 = vadd.f32 %v1394_v13, %v1386_v20  ;;  %v1398_v23 = vadd.f32 %v1394_v13, %v1384_v21 }
 0x337   : > { %1408 = vst.msk [vmem:[%s2450_s22 + $0x4] sm:$0x1] %vm1403_vm3, %v1399_v22  ;;  %1407 = vst.msk [vmem:[%s2450_s22 + $0x3] sm:$0x1] %vm1403_vm3, %v1398_v23 }
 0x338   : > { %v1390_v24 = vpop.xlane.xlu1 %1389  ;;  %v1388_v25 = vpop.xlane.xlu0 %1387 }
 0x339   : > { %v1401_v26 = vadd.f32 %v1394_v13, %v1390_v24  ;;  %v1400_v2 = vadd.f32 %v1394_v13, %v1388_v25 }
 0x33b   : > { %1410 = vst.msk [vmem:[%s2450_s22 + $0x6] sm:$0x1] %vm1403_vm3, %v1401_v26  ;;  %1409 = vst.msk [vmem:[%s2450_s22 + $0x5] sm:$0x1] %vm1403_vm3, %v1400_v2 }
 0x33c   : > { %v1392_v27 = vpop.xlane.xlu0 %1391 }
 0x33d   : > { %v1402_v28 = vadd.f32 %v1394_v13, %v1392_v27 }
 0x33f   : > { %1411 = vst.msk [vmem:[%s2450_s22 + $0x7] sm:$0x1] %vm1403_vm3, %v1402_v28 }
 0x340 PF: > { %s28_s8 = sadd.s32 1, %s2177_s8   ;;  %s2732_s0 = sld [smem:[#allocation19_spill]] }
 0x341   : > { %p25_p11 = scmp.ge.s32.totalorder %s28_s8, 6   ;;  %s2733_s20 = sld [smem:[#allocation25_spill]] }
 0x342   : > { %s2734_s30 = sld [smem:[#allocation24_spill]]  ;;  %s2735_s11 = sld [smem:[#allocation23_spill]] }
 0x343   : > { %s2736_s15 = sld [smem:[#allocation22_spill]]  ;;  %s2737_s4 = smov %s2145_s25 }
 0x344   : > { %s2739_s26 = smov %s2153_s27  ;;  %s2740_s27 = smov %s2157_s28 }
 0x345   : > { %s2742_s29 = smov %s2169_s6  ;;  %27 = sbr.rel (!%p25_p11) target bundleno = 25 (0x19), region = 106 }
 0x347   : > { %s2738_s25 = smov %s2733_s20 }
 0x348   : > { %s2741_s28 = smov %s2734_s30  ;;  %s2743_s30 = smov %s2173_s7 }
 0x349   : > { %s2744_s6 = smov %s2735_s11  ;;  %s2745_s7 = smov %s2736_s15 }
 0x34c   :  { %1432 = vsyncpa [#allocation8], 1 }
 0x34d   :  { %1434 = vsyncpa [#allocation8 + $0x1], 1 }
 0x34e   :  { %1435 = vsyncpa [#allocation10], 1 }
 0x34f   :  { %1437 = vsyncpa [#allocation10 + $0x1], 1 }

</bundles_post_ra>
